<compile_context>
chip_gen: v5e
topology: v5e:2x2
jax: 0.10.0
libtpu: 0.0.40
codegen_flags: <defaults>
</compile_context>

<pallas_src>
import jax
import jax.numpy as jnp
from jax.experimental import pallas as pl
from jax.experimental.pallas import tpu as pltpu

INPUT_SIZE = 4      # CartPole observation size (what the module's usage implies)
HIDDEN = 64
TILE_B = 128        # batch rows per grid step (multiple of 8)

# Packed parameter slab row layout: [w1 (INPUT_SIZE rows) | b1 | w2 | b2-in-col-0]
_ROW_B1 = INPUT_SIZE
_ROW_W2 = INPUT_SIZE + 1
_ROW_B2 = INPUT_SIZE + 2
_N_ROWS = INPUT_SIZE + 3


def critic_kernel(x_ref, p_ref, o_ref):
    x = x_ref[...]                                  # (TILE_B, INPUT_SIZE)
    w1 = p_ref[0:INPUT_SIZE, :]                     # (INPUT_SIZE, HIDDEN)
    b1 = p_ref[_ROW_B1:_ROW_B1 + 1, :]              # (1, HIDDEN)
    w2 = p_ref[_ROW_W2:_ROW_W2 + 1, :]              # (1, HIDDEN) lane-dense fc2 weight
    b2 = p_ref[_ROW_B2:_ROW_B2 + 1, 0:1]            # (1, 1) scalar bias

    # fc1 on the MXU (f32 accumulate), bias + ReLU on the VPU.
    h = jnp.dot(x, w1, preferred_element_type=jnp.float32)    # (TILE_B, HIDDEN)
    h = jnp.maximum(h + b1, 0.0)

    # fc2 as VPU multiply + lane (XLU) reduce — avoids an N=1 MXU matmul.
    y = jnp.sum(h * w2, axis=-1, keepdims=True) + b2           # (TILE_B, 1)
    o_ref[...] = y.astype(o_ref.dtype)


def critic_forward(x, packed_params):
    """x: (B, INPUT_SIZE) f32; packed_params: (_N_ROWS, HIDDEN) f32 -> (B, 1) f32."""
    B = x.shape[0]
    n_tiles = pl.cdiv(B, TILE_B)
    padded_b = n_tiles * TILE_B
    if padded_b != B:                  # static-shape branch: no-op when B % TILE_B == 0
        x = jnp.pad(x, ((0, padded_b - B), (0, 0)))

    out = pl.pallas_call(
        critic_kernel,
        out_shape=jax.ShapeDtypeStruct((padded_b, 1), jnp.float32),
        grid_spec=pltpu.PrefetchScalarGridSpec(
            num_scalar_prefetch=0,
            grid=(n_tiles,),
            in_specs=[
                pl.BlockSpec((TILE_B, INPUT_SIZE), lambda i: (i, 0)),   # batch tiles
                pl.BlockSpec((_N_ROWS, HIDDEN), lambda i: (0, 0)),      # resident params
            ],
            out_specs=pl.BlockSpec((TILE_B, 1), lambda i: (i, 0)),
        ),
        compiler_params=pltpu.CompilerParams(
            dimension_semantics=("parallel",)),   # shards batch tiles across v7x cores
    )(x, packed_params)
    return out[:B] if padded_b != B else out


def pack_params(w1, b1, w2, b2):
    """Pack fc1/fc2 params into one (INPUT_SIZE+3, HIDDEN) f32 slab (done once)."""
    b2_row = jnp.zeros((1, HIDDEN), jnp.float32).at[0, 0].set(b2[0, 0])
    return jnp.concatenate([w1, b1, w2, b2_row], axis=0)


def init_params(key):
    """PyTorch-default-ish init. w1 stored (in, out); w2 stored (out, in) = (1, 64)."""
    k1, k2, k3, k4 = jax.random.split(key, 4)
    bound1 = 1.0 / (INPUT_SIZE ** 0.5)
    bound2 = 1.0 / (HIDDEN ** 0.5)
    w1 = jax.random.uniform(k1, (INPUT_SIZE, HIDDEN), jnp.float32, -bound1, bound1)
    b1 = jax.random.uniform(k2, (1, HIDDEN), jnp.float32, -bound1, bound1)
    w2 = jax.random.uniform(k3, (1, HIDDEN), jnp.float32, -bound2, bound2)
    b2 = jax.random.uniform(k4, (1, 1), jnp.float32, -bound2, bound2)
    return w1, b1, w2, b2


if __name__ == "__main__":
    key = jax.random.PRNGKey(0)
    kx, kp = jax.random.split(key)

    BATCH = 256   # batched rollout observations (2 tiles -> amortizes the call)
    x = jax.random.normal(kx, (BATCH, INPUT_SIZE), jnp.float32)
    w1, b1, w2, b2 = init_params(kp)
    packed = pack_params(w1, b1, w2, b2)      # one-time packing, off the hot path

    out = jax.block_until_ready(critic_forward(x, packed))

    # Pure-JAX reference (same math as the PyTorch forward: relu(x@W1^T+b1)@W2^T+b2).
    ref = jnp.maximum(x @ w1 + b1, 0.0) @ w2.T + b2
    assert out.shape == (BATCH, 1)
    assert jnp.allclose(out, ref, atol=1e-5, rtol=1e-5)

    print("KERNEL_OK")
</pallas_src>

<mosaic_0001>
module attributes {stable_mosaic.version = 11 : i64} {
  func.func @critic_kernel(%arg0: i32, %arg1: memref<128x4xf32, #tpu.memory_space<vmem>>, %arg2: memref<7x64xf32, #tpu.memory_space<vmem>>, %arg3: memref<128x1xf32, #tpu.memory_space<vmem>>) attributes {dimension_semantics = [#tpu.dimension_semantics<parallel>], iteration_bounds = array<i64: 2>, scalar_prefetch = 0 : i64, scratch_operands = 0 : i64, tpu.core_type = #tpu.core_type<tc>, window_params = [{transform_indices = @transform_0, window_bounds = array<i64: 128, 4>}, {pipeline_mode = #tpu.pipeline_mode<synchronous>, transform_indices = @transform_1, window_bounds = array<i64: 7, 64>}, {transform_indices = @transform_2, window_bounds = array<i64: 128, 1>}]} {
    %c0 = arith.constant 0 : index
    %c0_0 = arith.constant 0 : index
    %0 = vector.load %arg1[%c0, %c0_0] : memref<128x4xf32, #tpu.memory_space<vmem>>, vector<128x4xf32>
    %c0_1 = arith.constant 0 : index
    %c0_2 = arith.constant 0 : index
    %1 = vector.load %arg2[%c0_1, %c0_2] : memref<7x64xf32, #tpu.memory_space<vmem>>, vector<4x64xf32>
    %c4 = arith.constant 4 : index
    %c0_3 = arith.constant 0 : index
    %2 = vector.load %arg2[%c4, %c0_3] : memref<7x64xf32, #tpu.memory_space<vmem>>, vector<1x64xf32>
    %c5 = arith.constant 5 : index
    %c0_4 = arith.constant 0 : index
    %3 = vector.load %arg2[%c5, %c0_4] : memref<7x64xf32, #tpu.memory_space<vmem>>, vector<1x64xf32>
    %c6 = arith.constant 6 : index
    %c0_5 = arith.constant 0 : index
    %4 = vector.load %arg2[%c6, %c0_5] : memref<7x64xf32, #tpu.memory_space<vmem>>, vector<1x1xf32>
    %cst = arith.constant dense<0.000000e+00> : vector<128x64xf32>
    %5 = tpu.matmul %0, %1, %cst {dimension_numbers = #tpu.dot_dimension_numbers<[1], [0], [0], [1], [0, 0, 1, 1], [], []>} : vector<128x4xf32>, vector<4x64xf32>, vector<128x64xf32> -> vector<128x64xf32>
    %6 = vector.broadcast %2 : vector<1x64xf32> to vector<128x64xf32>
    %7 = arith.addf %5, %6 : vector<128x64xf32>
    %cst_6 = arith.constant 0.000000e+00 : f32
    %8 = vector.broadcast %cst_6 : f32 to vector<128x64xf32>
    %9 = arith.maximumf %7, %8 : vector<128x64xf32>
    %10 = vector.broadcast %3 : vector<1x64xf32> to vector<128x64xf32>
    %11 = arith.mulf %9, %10 : vector<128x64xf32>
    %cst_7 = arith.constant dense<0.000000e+00> : vector<128xf32>
    %12 = vector.multi_reduction <add>, %11, %cst_7 [1] : vector<128x64xf32> to vector<128xf32>
    %13 = vector.shape_cast %12 : vector<128xf32> to vector<128x1xf32>
    %14 = vector.broadcast %4 : vector<1x1xf32> to vector<128x1xf32>
    %15 = arith.addf %13, %14 : vector<128x1xf32>
    %c0_8 = arith.constant 0 : index
    %c0_9 = arith.constant 0 : index
    %16 = vector.load %arg3[%c0_8, %c0_9] : memref<128x1xf32, #tpu.memory_space<vmem>>, vector<128x1xf32>
    tpu.vector_store %arg3[%c0_8, %c0_9], %15 {strides = array<i32>} : memref<128x1xf32, #tpu.memory_space<vmem>>, vector<128x1xf32>,
    return
  }
  func.func @transform_0(%arg0: i32) -> (i32, i32) {
    %c0_i32 = arith.constant 0 : i32
    %c0_i32_0 = arith.constant 0 : i32
    return %arg0, %c0_i32 : i32, i32
  }
  func.func @transform_1(%arg0: i32) -> (i32, i32) {
    %c0_i32 = arith.constant 0 : i32
    %c0_i32_0 = arith.constant 0 : i32
    %c0_i32_1 = arith.constant 0 : i32
    return %c0_i32, %c0_i32_0 : i32, i32
  }
  func.func @transform_2(%arg0: i32) -> (i32, i32) {
    %c0_i32 = arith.constant 0 : i32
    %c0_i32_0 = arith.constant 0 : i32
    return %arg0, %c0_i32 : i32, i32
  }
}

</mosaic_0001>

<bundles_post_ra>
// kernel: tpu_custom_call.1
= control target key start
LH: loop header
LB: loop body
LE: loop exit
PB: predicated region body
PF: predicated region fallthrough
CT: control target
= control target key end

     0   :  { %s523_s9 = smov 0   ;;  %s661_s0 = inlined_call_operand.vmem [shape: f32[256,4], index: 0, kind: input, shape index: {}]   ;;  %s662_s1 = inlined_call_operand.vmem [shape: f32[7,64], index: 1, kind: input, shape index: {}]   ;;  %s663_s2 = inlined_call_operand.vmem [shape: f32[256,1], index: 2, kind: output, shape index: {}]  }
   0x1 LB: > { %s458_s10 = sadd.s32 4294967295, %s506_s9   ;;  %p462_p0 = scmp.ge.s32.totalorder %s506_s9, 1  ;;  %s506_s9 = sphi %s523_s9, %s12_s9  }
   0x2   : > { %p113_p1 = scmp.lt.s32.totalorder %s506_s9, 3 }
   0x4   : > { %p114_p2 = pnand %p462_p0, %p113_p1 }
   0x5   : > { %s463_s13 = sshll.u32 (!%p114_p2), %s458_s10, 4 }
   0x6   : > { %117 = sbr.rel (%p114_p2) target bundleno = 315 (0x13b), region = 28  ;;  %p136_p3 = scmp.lt.s32.totalorder (!%p114_p2), %s463_s13, 31 }
   0xb   : > { %v163_v0 = vld [vmem:[%s662_s1] sm:$0xf]  ;;  %vm217_vm0 = vcmask 1043456   ;;  %s665_s13 = smov (!%p136_p3, %s463_s13), 31  ;;  %vm168_vm1 = vcmask 31744   ;;  %vm319_vm2 = vcmask 523264  }
   0xc   : > { %467 = vmatpush.msk.msra.mxu0 %vm217_vm0, %v163_v0  ;;  %486 = vmatpush.msk.msra.mxu1 %vm217_vm0, %v163_v0  ;;  %s464_s14 = sshll.u32 %s665_s13, 3  ;;  %v561_v17 = vld [vmem:[%s662_s1 + $0x4] ss:$0 sm:$0xff]  ;;  %v568_v22 = vld [vmem:[%s662_s1 + $0x5] ss:$0 sm:$0xff]  ;;  %vm385_vm3 = vcmask 7168  }
   0xd   : > { %487 = vmatpush.msk.msra.mxu2 %vm217_vm0, %v163_v0  ;;  %488 = vmatpush.msk.msra.mxu3 %vm217_vm0, %v163_v0  ;;  %s139_s17 = scalar_lea.vmem %s661_s0, %s464_s14  ;;  %s624_s26 = scalar_lea.vmem %s663_s2, %s464_s14 }
   0xe   : > { %v147_v1 = vld [vmem:[%s139_s17] sm:$0xff]  ;;  %v148_v5 = vld [vmem:[%s139_s17 + $0x8] sm:$0xff]  ;;  %v149_v9 = vld [vmem:[%s139_s17 + $0x10] sm:$0xff] }
   0xf   : > { %v151_v2 = vld [vmem:[%s139_s17 + $0x20] sm:$0xff]  ;;  %468 = vmatmul.msk.f32.vlgmr.msra.gmra.mxu0 %vm168_vm1, %v147_v1  ;;  %v152_v6 = vld [vmem:[%s139_s17 + $0x28] sm:$0xff]  ;;  %v153_v10 = vld [vmem:[%s139_s17 + $0x30] sm:$0xff] }
  0x10   : > { %v155_v3 = vld [vmem:[%s139_s17 + $0x40] sm:$0xff]  ;;  %472 = vmatmul.msk.f32.vlgmr.msra.gmra.mxu1 %vm168_vm1, %v151_v2  ;;  %v156_v7 = vld [vmem:[%s139_s17 + $0x48] sm:$0xff]  ;;  %v157_v11 = vld [vmem:[%s139_s17 + $0x50] sm:$0xff] }
  0x11   : > { %v159_v4 = vld [vmem:[%s139_s17 + $0x60] sm:$0xff]  ;;  %476 = vmatmul.msk.f32.vlgmr.msra.gmra.mxu2 %vm168_vm1, %v155_v3  ;;  %v160_v8 = vld [vmem:[%s139_s17 + $0x68] sm:$0xff]  ;;  %v161_v12 = vld [vmem:[%s139_s17 + $0x70] sm:$0xff] }
  0x12   : > { %480 = vmatmul.msk.f32.vlgmr.msra.gmra.mxu3 %vm168_vm1, %v159_v4  ;;  %v150_v13 = vld [vmem:[%s139_s17 + $0x18] sm:$0xff] }
  0x13   : > { %v154_v14 = vld [vmem:[%s139_s17 + $0x38] sm:$0xff] }
  0x14   : > { %v158_v15 = vld [vmem:[%s139_s17 + $0x58] sm:$0xff] }
  0x15   : > { %v162_v16 = vld [vmem:[%s139_s17 + $0x78] sm:$0xff] }
  0x17   : > { %469 = vmatmul.msk.f32.gmra.mxu0 %vm168_vm1, %v148_v5 }
  0x18   : > { %473 = vmatmul.msk.f32.gmra.mxu1 %vm168_vm1, %v152_v6 }
  0x19   : > { %477 = vmatmul.msk.f32.gmra.mxu2 %vm168_vm1, %v156_v7 }
  0x1a   : > { %481 = vmatmul.msk.f32.gmra.mxu3 %vm168_vm1, %v160_v8 }
  0x1f   : > { %470 = vmatmul.msk.f32.gmra.mxu0 %vm168_vm1, %v149_v9 }
  0x20   : > { %474 = vmatmul.msk.f32.gmra.mxu1 %vm168_vm1, %v153_v10 }
  0x21   : > { %478 = vmatmul.msk.f32.gmra.mxu2 %vm168_vm1, %v157_v11 }
  0x22   : > { %482 = vmatmul.msk.f32.gmra.mxu3 %vm168_vm1, %v161_v12 }
  0x27   : > { %471 = vmatmul.msk.f32.gmra.mxu0 %vm168_vm1, %v150_v13 }
  0x28   : > { %475 = vmatmul.msk.f32.gmra.mxu1 %vm168_vm1, %v154_v14 }
  0x29   : > { %479 = vmatmul.msk.f32.gmra.mxu2 %vm168_vm1, %v158_v15 }
  0x2a   : > { %483 = vmatmul.msk.f32.gmra.mxu3 %vm168_vm1, %v162_v16 }
  0x8c   : > { %v238_v18 = vpop.f32.mrf.mxu0 }
  0x8d   : > { %v250_v19 = vpop.f32.mrf.mxu1  ;;  %v239_v20 = vadd.f32 %v561_v17, %v238_v18 }
  0x8e   : > { %v251_v21 = vadd.f32 %v561_v17, %v250_v19 }
  0x8f   : > { %v286_v23 = vmax.f32 %v239_v20, 0.0 }
  0x90   : > { %v290_v24 = vmax.f32 %v251_v21, 0.0 }
  0x91   : > { %v303_v26 = vmul.f32 %v568_v22, %v286_v23 }
  0x92   : > { %v307_v25 = vmul.f32 %v568_v22, %v290_v24 }
  0x93   : > { %v320_v30 = vsel %vm319_vm2, %v303_v26, 0.0 }
  0x94   : > { %v262_v27 = vpop.f32.mrf.mxu2  ;;  %v332_v29 = vsel %vm319_vm2, %v307_v25, 0.0  ;;  %v241_v33 = vpop.f32.mrf.mxu0  ;;  %321 = vadd.xlane.f32.xlu0 %v320_v30 }
  0x95   : > { %v274_v28 = vpop.f32.mrf.mxu3  ;;  %v263_v31 = vadd.f32 %v561_v17, %v262_v27  ;;  %333 = vadd.xlane.f32.xlu2 %v332_v29  ;;  %v253_v34 = vpop.f32.mrf.mxu1  ;;  %v242_v38 = vadd.f32 %v561_v17, %v241_v33 }
  0x96   : > { %v275_v32 = vadd.f32 %v561_v17, %v274_v28  ;;  %v254_v37 = vadd.f32 %v561_v17, %v253_v34 }
  0x97   : > { %v294_v35 = vmax.f32 %v263_v31, 0.0  ;;  %v287_v44 = vmax.f32 %v242_v38, 0.0 }
  0x98   : > { %v298_v36 = vmax.f32 %v275_v32, 0.0  ;;  %v291_v43 = vmax.f32 %v254_v37, 0.0  ;;  %v499_v37 = vld [vmem:[%s662_s1 + $0x6] ss:$0 sm:$0xff] }
  0x99   : > { %v311_v39 = vmul.f32 %v568_v22, %v294_v35  ;;  %v304_v52 = vmul.f32 %v568_v22, %v287_v44 }
  0x9a   : > { %v315_v40 = vmul.f32 %v568_v22, %v298_v36  ;;  %v308_v49 = vmul.f32 %v568_v22, %v291_v43 }
  0x9b   : > { %v344_v41 = vsel %vm319_vm2, %v311_v39, 0.0  ;;  %v323_v59 = vsel %vm319_vm2, %v304_v52, 0.0 }
  0x9c   : > { %v356_v42 = vsel %vm319_vm2, %v315_v40, 0.0  ;;  %v265_v45 = vpop.f32.mrf.mxu2  ;;  %v244_v47 = vpop.f32.mrf.mxu0  ;;  %v335_v55 = vsel %vm319_vm2, %v308_v49, 0.0 }
  0x9d   : > { %v277_v46 = vpop.f32.mrf.mxu3  ;;  %345 = vadd.xlane.f32.xlu2 %v344_v41  ;;  %357 = vadd.xlane.f32.xlu0 %v356_v42  ;;  %v245_v48 = vadd.f32 %v561_v17, %v244_v47  ;;  %v266_v50 = vadd.f32 %v561_v17, %v265_v45  ;;  %v256_v53 = vpop.f32.mrf.mxu1 }
  0x9e   : > { %v257_v63 = vadd.f32 %v561_v17, %v256_v53  ;;  %v278_v30 = vadd.f32 %v561_v17, %v277_v46 }
  0x9f   : > { %v288_v51 = vmax.f32 %v245_v48, 0.0  ;;  %v295_v56 = vmax.f32 %v266_v50, 0.0 }
  0xa0   : > { %v292_v4 = vmax.f32 %v257_v63, 0.0  ;;  %v299_v34 = vmax.f32 %v278_v30, 0.0 }
  0xa1   : > { %v305_v54 = vmul.f32 %v568_v22, %v288_v51  ;;  %v312_v2 = vmul.f32 %v568_v22, %v295_v56 }
  0xa2   : > { %v309_v15 = vmul.f32 %v568_v22, %v292_v4  ;;  %v316_v35 = vmul.f32 %v568_v22, %v299_v34 }
  0xa3   : > { %v326_v58 = vsel %vm319_vm2, %v305_v54, 0.0  ;;  %v347_v9 = vsel %vm319_vm2, %v312_v2, 0.0 }
  0xa4   : > { %v268_v57 = vpop.f32.mrf.mxu2  ;;  %327 = vadd.xlane.f32.xlu1 %v326_v58  ;;  %v247_v62 = vpop.f32.mrf.mxu0  ;;  %v338_v24 = vsel %vm319_vm2, %v309_v15, 0.0  ;;  %v359_v36 = vsel %vm319_vm2, %v316_v35, 0.0 }
  0xa5   : > { %v280_v60 = vpop.f32.mrf.mxu3  ;;  %v269_v61 = vadd.f32 %v561_v17, %v268_v57  ;;  %324 = vadd.xlane.f32.xlu0 %v323_v59  ;;  %336 = vadd.xlane.f32.xlu2 %v335_v55  ;;  %v248_v0 = vadd.f32 %v561_v17, %v247_v62  ;;  %v259_v7 = vpop.f32.mrf.mxu1 }
  0xa6   : > { %v281_v12 = vadd.f32 %v561_v17, %v280_v60  ;;  %v260_v13 = vadd.f32 %v561_v17, %v259_v7 }
  0xa7   : > { %v296_v1 = vmax.f32 %v269_v61, 0.0  ;;  %v289_v5 = vmax.f32 %v248_v0, 0.0 }
  0xa8   : > { %v300_v19 = vmax.f32 %v281_v12, 0.0  ;;  %v293_v21 = vmax.f32 %v260_v13, 0.0 }
  0xa9   : > { %v313_v3 = vmul.f32 %v568_v22, %v296_v1  ;;  %v306_v14 = vmul.f32 %v568_v22, %v289_v5 }
  0xaa   : > { %v317_v27 = vmul.f32 %v568_v22, %v300_v19  ;;  %v310_v28 = vmul.f32 %v568_v22, %v293_v21 }
  0xab   : > { %v350_v6 = vsel %vm319_vm2, %v313_v3, 0.0  ;;  %v329_v23 = vsel %vm319_vm2, %v306_v14, 0.0 }
  0xac   : > { %v271_v8 = vpop.f32.mrf.mxu2  ;;  %351 = vadd.xlane.f32.xlu1 %v350_v6  ;;  %v362_v31 = vsel %vm319_vm2, %v317_v27, 0.0  ;;  %v341_v32 = vsel %vm319_vm2, %v310_v28, 0.0 }
  0xad   : > { %v283_v10 = vpop.f32.mrf.mxu3  ;;  %v272_v11 = vadd.f32 %v561_v17, %v271_v8  ;;  %348 = vadd.xlane.f32.xlu0 %v347_v9 }
  0xae   : > { %v284_v16 = vadd.f32 %v561_v17, %v283_v10 }
  0xaf   : > { %v297_v18 = vmax.f32 %v272_v11, 0.0 }
  0xb0   : > { %v301_v25 = vmax.f32 %v284_v16, 0.0 }
  0xb1   : > { %v314_v20 = vmul.f32 %v568_v22, %v297_v18 }
  0xb2   : > { %v318_v29 = vmul.f32 %v568_v22, %v301_v25 }
  0xb3   : > { %v353_v26 = vsel %vm319_vm2, %v314_v20, 0.0 }
  0xb4   : > { %354 = vadd.xlane.f32.xlu2 %v353_v26  ;;  %330 = vadd.xlane.f32.xlu1 %v329_v23  ;;  %v365_v33 = vsel %vm319_vm2, %v318_v29, 0.0 }
  0xb5   : > { %339 = vadd.xlane.f32.xlu0 %v338_v24 }
  0xbc   : > { %363 = vadd.xlane.f32.xlu2 %v362_v31  ;;  %342 = vadd.xlane.f32.xlu1 %v341_v32 }
  0xbd   : > { %366 = vadd.xlane.f32.xlu0 %v365_v33 }
  0xc4   : > { %360 = vadd.xlane.f32.xlu1 %v359_v36 }
 0x107   : > { %v322_v38 = vpop.xlane.xlu0 %321 }
 0x108   : > { %v334_v17 = vpop.xlane.xlu2 %333  ;;  %v369_v39 = vadd.f32 %v499_v37, %v322_v38 }
 0x109   : > { %v373_v22 = vadd.f32 %v499_v37, %v334_v17 }
 0x10a   : > { %386 = vst.msk [vmem:[%s624_s26] sm:$0xff] %vm385_vm3, %v369_v39 }
 0x10b   : > { %390 = vst.msk [vmem:[%s624_s26 + $0x20] sm:$0xff] %vm385_vm3, %v373_v22 }
 0x110   : > { %v346_v40 = vpop.xlane.xlu2 %345  ;;  %v358_v41 = vpop.xlane.xlu0 %357 }
 0x111   : > { %v377_v42 = vadd.f32 %v499_v37, %v346_v40  ;;  %v381_v43 = vadd.f32 %v499_v37, %v358_v41 }
 0x113   : > { %394 = vst.msk [vmem:[%s624_s26 + $0x40] sm:$0xff] %vm385_vm3, %v377_v42 }
 0x114   : > { %398 = vst.msk [vmem:[%s624_s26 + $0x60] sm:$0xff] %vm385_vm3, %v381_v43 }
 0x117   : > { %v328_v44 = vpop.xlane.xlu1 %327 }
 0x118   : > { %v325_v45 = vpop.xlane.xlu0 %324  ;;  %v371_v46 = vadd.f32 %v499_v37, %v328_v44  ;;  %v337_v48 = vpop.xlane.xlu2 %336 }
 0x119   : > { %v370_v47 = vadd.f32 %v499_v37, %v325_v45  ;;  %v374_v49 = vadd.f32 %v499_v37, %v337_v48 }
 0x11a   : > { %388 = vst.msk [vmem:[%s624_s26 + $0x10] sm:$0xff] %vm385_vm3, %v371_v46 }
 0x11b   : > { %387 = vst.msk [vmem:[%s624_s26 + $0x8] sm:$0xff] %vm385_vm3, %v370_v47 }
 0x11c   : > { %391 = vst.msk [vmem:[%s624_s26 + $0x28] sm:$0xff] %vm385_vm3, %v374_v49 }
 0x11f   : > { %v352_v50 = vpop.xlane.xlu1 %351 }
 0x120   : > { %v349_v51 = vpop.xlane.xlu0 %348  ;;  %v379_v52 = vadd.f32 %v499_v37, %v352_v50 }
 0x121   : > { %v378_v53 = vadd.f32 %v499_v37, %v349_v51 }
 0x122   : > { %396 = vst.msk [vmem:[%s624_s26 + $0x50] sm:$0xff] %vm385_vm3, %v379_v52 }
 0x123   : > { %395 = vst.msk [vmem:[%s624_s26 + $0x48] sm:$0xff] %vm385_vm3, %v378_v53 }
 0x127   : > { %v355_v54 = vpop.xlane.xlu2 %354  ;;  %v331_v56 = vpop.xlane.xlu1 %330 }
 0x128   : > { %v380_v55 = vadd.f32 %v499_v37, %v355_v54  ;;  %v340_v57 = vpop.xlane.xlu0 %339  ;;  %v372_v58 = vadd.f32 %v499_v37, %v331_v56 }
 0x129   : > { %v375_v59 = vadd.f32 %v499_v37, %v340_v57 }
 0x12a   : > { %397 = vst.msk [vmem:[%s624_s26 + $0x58] sm:$0xff] %vm385_vm3, %v380_v55 }
 0x12b   : > { %389 = vst.msk [vmem:[%s624_s26 + $0x18] sm:$0xff] %vm385_vm3, %v372_v58 }
 0x12c   : > { %392 = vst.msk [vmem:[%s624_s26 + $0x30] sm:$0xff] %vm385_vm3, %v375_v59 }
 0x12f   : > { %v364_v60 = vpop.xlane.xlu2 %363  ;;  %v343_v62 = vpop.xlane.xlu1 %342 }
 0x130   : > { %v383_v61 = vadd.f32 %v499_v37, %v364_v60  ;;  %v367_v63 = vpop.xlane.xlu0 %366  ;;  %v376_v0 = vadd.f32 %v499_v37, %v343_v62 }
 0x131   : > { %v384_v1 = vadd.f32 %v499_v37, %v367_v63 }
 0x132   : > { %400 = vst.msk [vmem:[%s624_s26 + $0x70] sm:$0xff] %vm385_vm3, %v383_v61 }
 0x133   : > { %393 = vst.msk [vmem:[%s624_s26 + $0x38] sm:$0xff] %vm385_vm3, %v376_v0 }
 0x134   : > { %401 = vst.msk [vmem:[%s624_s26 + $0x78] sm:$0xff] %vm385_vm3, %v384_v1 }
 0x137   : > { %v361_v2 = vpop.xlane.xlu1 %360 }
 0x138   : > { %v382_v3 = vadd.f32 %v499_v37, %v361_v2 }
 0x13a   : > { %399 = vst.msk [vmem:[%s624_s26 + $0x68] sm:$0xff] %vm385_vm3, %v382_v3 }
 0x13b PF: > { %s12_s9 = sadd.s32 1, %s506_s9  }
 0x13c   : > { %p9_p4 = scmp.ge.s32.totalorder %s12_s9, 4  }
 0x13e   :  { %11 = sbr.rel (!%p9_p4) target bundleno = 1 (0x1), region = 58 }

</bundles_post_ra>
